<compile_context>
chip_gen: v6e
topology: v6e:2x2x1
jax: 0.10.0
libtpu: 0.0.40
codegen_flags: <defaults>
</compile_context>

<pallas_src>
import math
from functools import partial

import jax
import jax.numpy as jnp
from jax.experimental import pallas as pl
from jax.experimental.pallas import tpu as pltpu

HIDDEN_LAYERS = 4
DIM = 20                     # `dim` in the PyTorch script
P = 10                       # the global `p` (input feature dim)
P1 = P + 1                   # x features + constant ones row (bias folding)
H = 24                       # DIM padded up to a multiple of 8 sublanes
S = HIDDEN_LAYERS * H + 1    # rows of the stacked x-projection weight (97)


def _round_up(a, b):
    return (a + b - 1) // b * b


# --------------------------------------------------------------------------
# Kernel
# --------------------------------------------------------------------------
def mlp_kernel(x_ref, wx_ref, wh_ref, who_ref, out_ref):
    """Feature-major MLP tile.

    x_ref   : [P1, TN] bf16   -- x features (rows 0:P) + ones row (row P)
    wx_ref  : [S,  P1] bf16   -- stacked x-parts of all layers, biases folded
    wh_ref  : [3H, H ] bf16   -- h-parts of hidden layers 1..3, zero-padded
    who_ref : [1,  H ] bf16   -- h-part of the output layer, zero-padded
    out_ref : [1, TN] f32     -- lane-dense output slab
    """
    f32 = jnp.float32
    bf16 = jnp.bfloat16

    x = x_ref[...]                                                 # [P1, TN]

    # Every x-dependent pre-activation (+ folded biases) in one MXU matmul,
    # independent of the serial h chain.
    x_proj = jnp.dot(wx_ref[...], x, preferred_element_type=f32)  # [S, TN]

    # Layer 0 depends only on x (its block of x_proj already includes b0).
    h = jax.nn.sigmoid(x_proj[0:H, :])                             # [H, TN]

    # Hidden layers 1..3: sigmoid(Wh @ h + Wx @ x + b); the (Wx @ x + b) part
    # is a sublane-aligned slice of x_proj (no concat buffer, no bias add).
    for l in range(1, HIDDEN_LAYERS):
        wh = wh_ref[(l - 1) * H:l * H, :]                          # [H, H]
        h = jax.nn.sigmoid(
            jnp.dot(wh, h.astype(bf16), preferred_element_type=f32)
            + x_proj[l * H:(l + 1) * H, :])

    # Output layer -> lane-dense [1, TN] slab.
    out_ref[...] = jax.nn.sigmoid(
        jnp.dot(who_ref[...], h.astype(bf16), preferred_element_type=f32)
        + x_proj[HIDDEN_LAYERS * H:HIDDEN_LAYERS * H + 1, :]
    ).astype(out_ref.dtype)


# --------------------------------------------------------------------------
# Parameter construction / preparation
# --------------------------------------------------------------------------
def init_params(key):
    """Deterministic PyTorch-style (uniform +/- 1/sqrt(fan_in)) Linear init."""
    layer_shapes = ([(DIM, P)]
                    + [(DIM, DIM + P)] * (HIDDEN_LAYERS - 1)
                    + [(1, DIM + P)])
    params = []
    for i, (out_f, in_f) in enumerate(layer_shapes):
        kw, kb = jax.random.split(jax.random.fold_in(key, i))
        bound = 1.0 / math.sqrt(in_f)
        w = jax.random.uniform(kw, (out_f, in_f), jnp.float32, -bound, bound)
        b = jax.random.uniform(kb, (out_f,), jnp.float32, -bound, bound)
        params.append((w, b))
    return params


def prepare_params(params, dtype=jnp.bfloat16):
    """One-time prep from native PyTorch [out, in] weights.

    Returns (wx_stack [S, P1], wh_stack [3H, H], who [1, H]) where:
      * wx_stack stacks every layer's x-columns plus its bias (folded as an
        extra column multiplied by the ones row of x), each block zero-padded
        to H rows (output block is 1 row),
      * wh_stack stacks the hidden layers' h-columns, zero-padded to [H, H],
      * who is the output layer's h-columns, zero-padded to [1, H].
    Zero padding is exact: padded h entries are sigmoid(0)=0.5 but always meet
    zero weight columns downstream.
    """
    def xblock(w_x, b, rows):
        blk = jnp.zeros((rows, P1), jnp.float32)
        blk = blk.at[:w_x.shape[0], :P].set(w_x)
        blk = blk.at[:w_x.shape[0], P].set(b)
        return blk

    (w0, b0) = params[0]
    hidden = params[1:-1]
    (wo, bo) = params[-1]

    wx_blocks = [xblock(w0, b0, H)]
    wh_blocks = []
    for (w, b) in hidden:
        wh = jnp.zeros((H, H), jnp.float32).at[:DIM, :DIM].set(w[:, :DIM])
        wh_blocks.append(wh)
        wx_blocks.append(xblock(w[:, DIM:], b, H))
    wx_blocks.append(xblock(wo[:, DIM:], bo, 1))

    who = jnp.zeros((1, H), jnp.float32).at[:, :DIM].set(wo[:, :DIM])

    wx_stack = jnp.concatenate(wx_blocks, axis=0).astype(dtype)   # [97, 11]
    wh_stack = jnp.concatenate(wh_blocks, axis=0).astype(dtype)   # [72, 24]
    return wx_stack, wh_stack, who.astype(dtype)


# --------------------------------------------------------------------------
# Forward wrapper (jitted: transpose/pad/slice fuse around the pallas_call)
# --------------------------------------------------------------------------
@partial(jax.jit, static_argnames=("max_tile_n",))
def neural_net_forward(x, wx_stack, wh_stack, who, *, max_tile_n=8192):
    """Pallas-backed equivalent of NeuralNet.forward. Returns [N, 1] f32."""
    x_input = jnp.asarray(x, jnp.float32).reshape(-1, P)   # mirrors x.view(-1, p)
    n = x_input.shape[0]

    # Balanced tiling: >=2 (even) grid steps so v7x can shard across both
    # TensorCores, tn a multiple of 128 lanes, padding waste < 128/step.
    steps = max(pl.cdiv(n, max_tile_n), 2)
    steps += steps % 2
    tn = _round_up(pl.cdiv(n, steps), 128)
    n_pad = steps * tn

    # Feature-major bf16 x with a ones row appended (bias folding); this,
    # the pad and the final slice are fused under jit with the pallas_call.
    x_fm = jnp.concatenate(
        [x_input.astype(jnp.bfloat16).T,
         jnp.ones((1, n), jnp.bfloat16)], axis=0)           # [P1, n]
    x_fm = jnp.pad(x_fm, ((0, 0), (0, n_pad - n)))

    out = pl.pallas_call(
        mlp_kernel,
        out_shape=jax.ShapeDtypeStruct((1, n_pad), jnp.float32),
        grid=(steps,),
        in_specs=[
            pl.BlockSpec((P1, tn), lambda i: (0, i)),
            pl.BlockSpec(wx_stack.shape, lambda i: (0, 0)),   # resident
            pl.BlockSpec(wh_stack.shape, lambda i: (0, 0)),   # resident
            pl.BlockSpec(who.shape, lambda i: (0, 0)),        # resident
        ],
        out_specs=pl.BlockSpec((1, tn), lambda i: (0, i)),
        compiler_params=pltpu.CompilerParams(
            dimension_semantics=("parallel",)),
    )(x_fm, wx_stack, wh_stack, who)

    return out[0, :n].reshape(n, 1)


# --------------------------------------------------------------------------
# References
# --------------------------------------------------------------------------
def neural_net_forward_ref(x, params):
    """Pure-f32 JAX reference (mirrors the PyTorch forward exactly)."""
    x_input = jnp.asarray(x, jnp.float32).reshape(-1, P)
    w0, b0 = params[0]
    h = jax.nn.sigmoid(x_input @ w0.T + b0)
    for (w, b) in params[1:-1]:
        h = jax.nn.sigmoid(jnp.concatenate([h, x_input], axis=1) @ w.T + b)
    wo, bo = params[-1]
    return jax.nn.sigmoid(jnp.concatenate([h, x_input], axis=1) @ wo.T + bo)


def neural_net_forward_ref_bf16(x, params):
    """Reference that mimics the kernel's bf16 operands / f32 accumulation."""
    bf16, f32 = jnp.bfloat16, jnp.float32
    x_input = jnp.asarray(x, f32).reshape(-1, P).astype(bf16)
    w0, b0 = params[0]
    h = jax.nn.sigmoid(
        jnp.dot(x_input, w0.astype(bf16).T, preferred_element_type=f32)
        + b0.astype(bf16).astype(f32))
    for (w, b) in params[1:-1]:
        cat = jnp.concatenate([h.astype(bf16), x_input], axis=1)
        h = jax.nn.sigmoid(
            jnp.dot(cat, w.astype(bf16).T, preferred_element_type=f32)
            + b.astype(bf16).astype(f32))
    wo, bo = params[-1]
    cat = jnp.concatenate([h.astype(bf16), x_input], axis=1)
    return jax.nn.sigmoid(
        jnp.dot(cat, wo.astype(bf16).T, preferred_element_type=f32)
        + bo.astype(bf16).astype(f32))


if __name__ == "__main__":
    key = jax.random.PRNGKey(0)
    k_param, k_x1, k_x2 = jax.random.split(key, 3)

    params = init_params(k_param)
    wx_stack, wh_stack, who = prepare_params(params)

    # Small batch: 2 grid steps of one 128-lane tile each.
    x_small = jax.random.normal(k_x1, (8, P), dtype=jnp.float32)
    out_small = jax.block_until_ready(
        neural_net_forward(x_small, wx_stack, wh_stack, who))
    assert out_small.shape == (8, 1)
    assert jnp.allclose(out_small, neural_net_forward_ref_bf16(x_small, params),
                        atol=1e-3)
    assert jnp.allclose(out_small, neural_net_forward_ref(x_small, params),
                        atol=5e-2)

    # Multi-tile grid + ragged final tile: 333 rows, max_tile_n=128 -> 4 steps.
    x_big = jax.random.normal(k_x2, (333, P), dtype=jnp.float32)
    out_big = jax.block_until_ready(
        neural_net_forward(x_big, wx_stack, wh_stack, who, max_tile_n=128))
    assert out_big.shape == (333, 1)
    assert jnp.allclose(out_big, neural_net_forward_ref_bf16(x_big, params),
                        atol=1e-3)
    assert jnp.allclose(out_big, neural_net_forward_ref(x_big, params),
                        atol=5e-2)

    print("KERNEL_OK")
</pallas_src>

<mosaic_0001>
module attributes {stable_mosaic.version = 11 : i64} {
  func.func @mlp_kernel(%arg0: i32, %arg1: memref<11x128xbf16, #tpu.memory_space<vmem>>, %arg2: memref<97x11xbf16, #tpu.memory_space<vmem>>, %arg3: memref<72x24xbf16, #tpu.memory_space<vmem>>, %arg4: memref<1x24xbf16, #tpu.memory_space<vmem>>, %arg5: memref<1x128xf32, #tpu.memory_space<vmem>>) attributes {dimension_semantics = [#tpu.dimension_semantics<parallel>], iteration_bounds = array<i64: 2>, scalar_prefetch = 0 : i64, scratch_operands = 0 : i64, tpu.core_type = #tpu.core_type<tc>, window_params = [{transform_indices = @transform_0, window_bounds = array<i64: 11, 128>}, {pipeline_mode = #tpu.pipeline_mode<synchronous>, transform_indices = @transform_1, window_bounds = array<i64: 97, 11>}, {pipeline_mode = #tpu.pipeline_mode<synchronous>, transform_indices = @transform_2, window_bounds = array<i64: 72, 24>}, {pipeline_mode = #tpu.pipeline_mode<synchronous>, transform_indices = @transform_3, window_bounds = array<i64: 1, 24>}, {transform_indices = @transform_4, window_bounds = array<i64: 1, 128>}]} {
    %c0 = arith.constant 0 : index
    %c0_0 = arith.constant 0 : index
    %0 = vector.load %arg1[%c0, %c0_0] : memref<11x128xbf16, #tpu.memory_space<vmem>>, vector<11x128xbf16>
    %c0_1 = arith.constant 0 : index
    %c0_2 = arith.constant 0 : index
    %1 = vector.load %arg2[%c0_1, %c0_2] : memref<97x11xbf16, #tpu.memory_space<vmem>>, vector<97x11xbf16>
    %cst = arith.constant dense<0.000000e+00> : vector<97x128xf32>
    %2 = tpu.matmul %1, %0, %cst {dimension_numbers = #tpu.dot_dimension_numbers<[1], [0], [0], [1], [0, 0, 1, 1], [], []>} : vector<97x11xbf16>, vector<11x128xbf16>, vector<97x128xf32> -> vector<97x128xf32>
    %3 = vector.extract_strided_slice %2 {offsets = [0, 0], sizes = [24, 128], strides = [1, 1]} : vector<97x128xf32> to vector<24x128xf32>
    %4 = arith.negf %3 : vector<24x128xf32>
    %5 = math.exp %4 : vector<24x128xf32>
    %cst_3 = arith.constant 1.000000e+00 : f32
    %6 = vector.broadcast %cst_3 : f32 to vector<24x128xf32>
    %7 = arith.addf %6, %5 : vector<24x128xf32>
    %8 = arith.divf %6, %7 : vector<24x128xf32>
    %c0_4 = arith.constant 0 : index
    %c0_5 = arith.constant 0 : index
    %9 = vector.load %arg3[%c0_4, %c0_5] : memref<72x24xbf16, #tpu.memory_space<vmem>>, vector<24x24xbf16>
    %10 = arith.truncf %8 : vector<24x128xf32> to vector<24x128xbf16>
    %cst_6 = arith.constant dense<0.000000e+00> : vector<24x128xf32>
    %11 = tpu.matmul %9, %10, %cst_6 {dimension_numbers = #tpu.dot_dimension_numbers<[1], [0], [0], [1], [0, 0, 1, 1], [], []>} : vector<24x24xbf16>, vector<24x128xbf16>, vector<24x128xf32> -> vector<24x128xf32>
    %12 = vector.extract_strided_slice %2 {offsets = [24, 0], sizes = [24, 128], strides = [1, 1]} : vector<97x128xf32> to vector<24x128xf32>
    %13 = arith.addf %11, %12 : vector<24x128xf32>
    %14 = arith.negf %13 : vector<24x128xf32>
    %15 = math.exp %14 : vector<24x128xf32>
    %cst_7 = arith.constant 1.000000e+00 : f32
    %16 = vector.broadcast %cst_7 : f32 to vector<24x128xf32>
    %17 = arith.addf %16, %15 : vector<24x128xf32>
    %18 = arith.divf %16, %17 : vector<24x128xf32>
    %c24 = arith.constant 24 : index
    %c0_8 = arith.constant 0 : index
    %19 = vector.load %arg3[%c24, %c0_8] : memref<72x24xbf16, #tpu.memory_space<vmem>>, vector<24x24xbf16>
    %20 = arith.truncf %18 : vector<24x128xf32> to vector<24x128xbf16>
    %cst_9 = arith.constant dense<0.000000e+00> : vector<24x128xf32>
    %21 = tpu.matmul %19, %20, %cst_9 {dimension_numbers = #tpu.dot_dimension_numbers<[1], [0], [0], [1], [0, 0, 1, 1], [], []>} : vector<24x24xbf16>, vector<24x128xbf16>, vector<24x128xf32> -> vector<24x128xf32>
    %22 = vector.extract_strided_slice %2 {offsets = [48, 0], sizes = [24, 128], strides = [1, 1]} : vector<97x128xf32> to vector<24x128xf32>
    %23 = arith.addf %21, %22 : vector<24x128xf32>
    %24 = arith.negf %23 : vector<24x128xf32>
    %25 = math.exp %24 : vector<24x128xf32>
    %cst_10 = arith.constant 1.000000e+00 : f32
    %26 = vector.broadcast %cst_10 : f32 to vector<24x128xf32>
    %27 = arith.addf %26, %25 : vector<24x128xf32>
    %28 = arith.divf %26, %27 : vector<24x128xf32>
    %c48 = arith.constant 48 : index
    %c0_11 = arith.constant 0 : index
    %29 = vector.load %arg3[%c48, %c0_11] : memref<72x24xbf16, #tpu.memory_space<vmem>>, vector<24x24xbf16>
    %30 = arith.truncf %28 : vector<24x128xf32> to vector<24x128xbf16>
    %cst_12 = arith.constant dense<0.000000e+00> : vector<24x128xf32>
    %31 = tpu.matmul %29, %30, %cst_12 {dimension_numbers = #tpu.dot_dimension_numbers<[1], [0], [0], [1], [0, 0, 1, 1], [], []>} : vector<24x24xbf16>, vector<24x128xbf16>, vector<24x128xf32> -> vector<24x128xf32>
    %32 = vector.extract_strided_slice %2 {offsets = [72, 0], sizes = [24, 128], strides = [1, 1]} : vector<97x128xf32> to vector<24x128xf32>
    %33 = arith.addf %31, %32 : vector<24x128xf32>
    %34 = arith.negf %33 : vector<24x128xf32>
    %35 = math.exp %34 : vector<24x128xf32>
    %cst_13 = arith.constant 1.000000e+00 : f32
    %36 = vector.broadcast %cst_13 : f32 to vector<24x128xf32>
    %37 = arith.addf %36, %35 : vector<24x128xf32>
    %38 = arith.divf %36, %37 : vector<24x128xf32>
    %c0_14 = arith.constant 0 : index
    %c0_15 = arith.constant 0 : index
    %39 = vector.load %arg4[%c0_14, %c0_15] : memref<1x24xbf16, #tpu.memory_space<vmem>>, vector<1x24xbf16>
    %40 = arith.truncf %38 : vector<24x128xf32> to vector<24x128xbf16>
    %cst_16 = arith.constant dense<0.000000e+00> : vector<1x128xf32>
    %41 = tpu.matmul %39, %40, %cst_16 {dimension_numbers = #tpu.dot_dimension_numbers<[1], [0], [0], [1], [0, 0, 1, 1], [], []>} : vector<1x24xbf16>, vector<24x128xbf16>, vector<1x128xf32> -> vector<1x128xf32>
    %42 = vector.extract_strided_slice %2 {offsets = [96, 0], sizes = [1, 128], strides = [1, 1]} : vector<97x128xf32> to vector<1x128xf32>
    %43 = arith.addf %41, %42 : vector<1x128xf32>
    %44 = arith.negf %43 : vector<1x128xf32>
    %45 = math.exp %44 : vector<1x128xf32>
    %cst_17 = arith.constant 1.000000e+00 : f32
    %46 = vector.broadcast %cst_17 : f32 to vector<1x128xf32>
    %47 = arith.addf %46, %45 : vector<1x128xf32>
    %48 = arith.divf %46, %47 : vector<1x128xf32>
    %c0_18 = arith.constant 0 : index
    %c0_19 = arith.constant 0 : index
    %49 = vector.load %arg5[%c0_18, %c0_19] : memref<1x128xf32, #tpu.memory_space<vmem>>, vector<1x128xf32>
    tpu.vector_store %arg5[%c0_18, %c0_19], %48 {strides = array<i32>} : memref<1x128xf32, #tpu.memory_space<vmem>>, vector<1x128xf32>,
    return
  }
  func.func @transform_0(%arg0: i32) -> (i32, i32) {
    %c0_i32 = arith.constant 0 : i32
    %c0_i32_0 = arith.constant 0 : i32
    return %c0_i32, %arg0 : i32, i32
  }
  func.func @transform_1(%arg0: i32) -> (i32, i32) {
    %c0_i32 = arith.constant 0 : i32
    %c0_i32_0 = arith.constant 0 : i32
    %c0_i32_1 = arith.constant 0 : i32
    return %c0_i32, %c0_i32_0 : i32, i32
  }
  func.func @transform_2(%arg0: i32) -> (i32, i32) {
    %c0_i32 = arith.constant 0 : i32
    %c0_i32_0 = arith.constant 0 : i32
    %c0_i32_1 = arith.constant 0 : i32
    return %c0_i32, %c0_i32_0 : i32, i32
  }
  func.func @transform_3(%arg0: i32) -> (i32, i32) {
    %c0_i32 = arith.constant 0 : i32
    %c0_i32_0 = arith.constant 0 : i32
    %c0_i32_1 = arith.constant 0 : i32
    return %c0_i32, %c0_i32_0 : i32, i32
  }
  func.func @transform_4(%arg0: i32) -> (i32, i32) {
    %c0_i32 = arith.constant 0 : i32
    %c0_i32_0 = arith.constant 0 : i32
    return %c0_i32, %arg0 : i32, i32
  }
}

</mosaic_0001>

<bundles_post_ra>
// kernel: neural_net_forward.1
= control target key start
LH: loop header
LB: loop body
LE: loop exit
PB: predicated region body
PF: predicated region fallthrough
CT: control target
= control target key end

     0   :  { %s1091_s15 = smov 0   ;;  %s1093_s16 = smov 0   ;;  %s1231_s0 = inlined_call_operand.vmem [shape: bf16[11,256], index: 0, kind: input, shape index: {}]   ;;  %s1232_s1 = inlined_call_operand.vmem [shape: bf16[97,11], index: 1, kind: input, shape index: {}]   ;;  %s1233_s2 = inlined_call_operand.vmem [shape: bf16[72,24], index: 2, kind: input, shape index: {}]   ;;  %s1234_s3 = inlined_call_operand.vmem [shape: bf16[1,24], index: 3, kind: input, shape index: {}]   ;;  %s1235_s4 = inlined_call_operand.vmem [shape: f32[1,256], index: 4, kind: output, shape index: {}]  }
   0x1   :  { %s1095_s17 = smov 0  }
   0x2 LB: > { %s805_s18 = sadd.s32 4294967295, %s1061_s17   ;;  %s1108_s19 = sadd.s32 1, %s1061_s17   ;;  %s1061_s17 = sphi %s1095_s17, %s1238_s17   ;;  %s1057_s16 = sphi %s1093_s16, %s1237_s16   ;;  %s1053_s15 = sphi %s1091_s15, %s1236_s15  }
   0x3   : > { %s18_s20 = ssub.s32 %s1061_s17, %s1108_s19  ;;  %s21_s21 = sadd.s32 1, %s1057_s16 }
   0x4   : > { %p19_p0 = scmp.eq.s32.totalorder %s18_s20, 0  ;;  %p28_p1 = scmp.ne.s32.totalorder %s1057_s16, %s1053_s15 }
   0x5   : > { %p29_p2 = scmp.eq.s32.totalorder %s1061_s17, 0  ;;  %p808_p4 = scmp.ge.s32.totalorder %s1061_s17, 2 }
   0x6   : > { %s1117_s22 = scalar_select %p19_p0, %s1057_s16, %s21_s21  }
   0x7   : > { %p30_p3 = por %p29_p2, %p28_p1  ;;  %152 = sbr.rel (%p808_p4) target bundleno = 17 (0x11), region = 28 }
   0xc   : > { %155 = sbr.rel (!%p30_p3) target bundleno = 17 (0x11), region = 32  ;;  %s157_s23 = sand.u32 (%p30_p3), 1, %s1057_s16  }
   0xd   : > { %s810_s24 = sshll.u32 (%p30_p3), %s1061_s17, 2  ;;  %s809_s25 = sshll.u32 (%p30_p3), %s157_s23, 3 }
   0xe   : > { %s161_s28 = scalar_lea.vmem (%p30_p3), %s1231_s0, %s810_s24  ;;  %s159_s29 = scalar_lea.vmem (%p30_p3), [#allocation2], %s809_s25 }
   0xf   : > { %v178_v0 = vld [vmem:[%s161_s28] sm:$0xf] (%p30_p3)  ;;  %v180_v1 = vld [vmem:[%s161_s28 + $0x8] sm:$0xf] (%p30_p3) }
  0x10   : > { %179 = vst [vmem:[%s159_s29] sm:$0xf] (%p30_p3), %v178_v0  ;;  %181 = vst [vmem:[%s159_s29 + $0x4] sm:$0xf] (%p30_p3), %v180_v1 }
  0x11 PF: > { %p811_p5 = scmp.ge.s32.totalorder %s1061_s17, 1  ;;  %p208_p6 = scmp.lt.s32.totalorder %s1061_s17, 3 }
  0x13   : > { %p209_p7 = pnand %p811_p5, %p208_p6 }
  0x14   : > { %s215_s30 = sand.u32 (!%p209_p7), 1, %s1053_s15   ;;  %p238_p8 = scmp.lt.s32.totalorder (!%p209_p7), %s805_s18, 1 }
  0x15   : > { %212 = sbr.rel (%p209_p7) target bundleno = 1221 (0x4c5), region = 73  ;;  %s812_s5 = sshll.u32 (!%p209_p7), %s215_s30, 3 }
  0x16   : > { %s217_s6 = scalar_lea.vmem (!%p209_p7), [#allocation2], %s812_s5 }
  0x1a   : > { %vm317_vm0 = vcmask 1044480   ;;  %vm318_vm1 = vcmask 1045504   ;;  %v1063_v2 = vmov 0.0   ;;  %v1064_v3 = vmov 65535   ;;  %v973_v6 = vld [vmem:[%s217_s6] sm:$0x3f]  }
  0x1b   : > { %879 = vmatprep.subr.bf16.mxu0 %v1063_v2  ;;  %v319_v4 = vsel %vm317_vm0, 4294967295, %v1064_v3  ;;  %941 = vmatprep.subr.bf16.mxu1 %v1063_v2  ;;  %vm1065_vm2 = vmmov 0   ;;  %v974_v7 = vld [vmem:[%s1232_s1] sm:$0xff]   ;;  %vm295_vm3 = vcmask 89088   ;;  %v975_v9 = vld [vmem:[%s1232_s1 + $0x8] sm:$0xff]   ;;  %v977_v11 = vld [vmem:[%s1232_s1 + $0x10] sm:$0xff]  }
  0x1c   : > { %v320_v5 = vsel %vm318_vm1, %v319_v4, 0  ;;  %881 = vmatprep.mubr.msk.bf16.mxu0 %vm1065_vm2, %v1063_v2  ;;  %905 = vmatprep.mubr.msk.bf16.mxu1 %vm1065_vm2, %v1063_v2  ;;  %v976_v10 = vld [vmem:[%s1232_s1 + $0x30] ss:$0 sps:$4 sm:$0x11]   ;;  %v978_v12 = vld [vmem:[%s1233_s2] sm:$0xff]   ;;  %vm443_vm4 = vcmask 195584  }
  0x1d   : > { %v322_v8 = vand.u32 %v973_v6, %v320_v5  ;;  %vm450_vm5 = vcmask 1043456   ;;  %v979_v36 = vld [vmem:[%s1233_s2 + $0x8] ss:$0 sps:$4 sm:$0xff]   ;;  %v980_v45 = vld [vmem:[%s1232_s1 + $0x18] sm:$0xff]   ;;  %v981_v46 = vld [vmem:[%s1232_s1 + $0x20] sm:$0xff]   ;;  %s1240_s18 = smov (!%p238_p8, %s805_s18), 1 }
  0x1e   : > { %v982_v47 = vld [vmem:[%s1233_s2 + $0xc] sm:$0xff]   ;;  %s240_s20 = scalar_lea.vmem %s1235_s4, %s1240_s18 }
  0x1f   : > { %880 = vmatpush3.bf16.msra.mxu0 %v322_v8  ;;  %942 = vmatpush3.bf16.msra.mxu1 %v322_v8 }
  0x22   : > { %882 = vmatmul.mubr.msk.bf16.vlgmr.msra.gmra.mxu0 %vm295_vm3, %v974_v7  ;;  %906 = vmatmul.mubr.msk.bf16.vlgmr.msra.gmra.mxu1 %vm295_vm3, %v976_v10  ;;  %v983_v7 = vld [vmem:[%s1233_s2 + $0x14] ss:$0 sps:$4 sm:$0xff]  }
  0x23   : > { %885 = vmatprep.mubr.msk.bf16.mxu0 %vm1065_vm2, %v1063_v2  ;;  %913 = vmatprep.mubr.msk.bf16.mxu1 %vm443_vm4, %v978_v12 }
  0x2a   : > { %886 = vmatmul.mubr.msk.bf16.gmra.mxu0 %vm295_vm3, %v975_v9 }
  0x2b   : > { %889 = vmatprep.mubr.msk.bf16.mxu0 %vm1065_vm2, %v1063_v2 }
  0x32   : > { %890 = vmatmul.mubr.msk.bf16.gmra.mxu0 %vm295_vm3, %v977_v11 }
  0x33   : > { %893 = vmatprep.mubr.msk.bf16.mxu0 %vm1065_vm2, %v1063_v2 }
  0x3a   : > { %894 = vmatmul.mubr.msk.bf16.gmra.mxu0 %vm295_vm3, %v980_v45 }
  0x3b   : > { %897 = vmatprep.mubr.msk.bf16.mxu0 %vm1065_vm2, %v1063_v2 }
  0x42   : > { %898 = vmatmul.mubr.msk.bf16.gmra.mxu0 %vm295_vm3, %v981_v46 }
  0x43   : > { %901 = vmatprep.mubr.msk.bf16.mxu0 %vm1065_vm2, %v1063_v2 }
  0xe2   : > { %v358_v13 = vpop.f32.mrf.mxu0  ;;  %v1166_v37 = vpop.f32.mrf.mxu1 }
  0xe3   : > { %v828_v16 = vmul.f32 -1.442695, %v358_v13 }
  0xe4   : > { %v883_v14 = vpop.f32.mrf.mxu0  ;;  %v907_v39 = vpop.f32.mrf.mxu1 }
  0xe6   : > { %v361_v15 = vpop.f32.mrf.mxu0  ;;  %v409_v41 = vpop.f32.mrf.mxu1 }
  0xe7   : > { %v829_v17 = vmul.f32 -1.442695, %v361_v15  ;;  %v986_v41 = vld [vmem:[%s1233_s2 + $0x20] ss:$0 sps:$4 sm:$0xff]  }
  0xe8   : > { %v884_v18 = vpop.f32.mrf.mxu0  ;;  %v908_v43 = vpop.f32.mrf.mxu1 }
  0xe9   : > { %987 = vpow2.f32 %v829_v17  ;;  %v985_v17 = vld [vmem:[%s1233_s2 + $0x18] sm:$0xff]  }
  0xea   : > { %v366_v19 = vpop.f32.mrf.mxu0  ;;  %989 = vpow2.f32 %v828_v16  ;;  %v984_v16 = vld [vmem:[%s1232_s1 + $0x28] sm:$0xff]  }
  0xeb   : > { %v830_v20 = vmul.f32 -1.442695, %v366_v19  ;;  %902 = vmatmul.mubr.msk.bf16.gmra.mxu0 %vm295_vm3, %v984_v16 }
  0xec   : > { %v887_v21 = vpop.f32.mrf.mxu0 }
  0xed   : > { %991 = vpow2.f32 %v830_v20 }
  0xee   : > { %v369_v22 = vpop.f32.mrf.mxu0 }
  0xf0   : > { %v888_v23 = vpop.f32.mrf.mxu0 }
  0xf2   : > { %v374_v38 = vpop.f32.mrf.mxu0 }
  0xf4   : > { %v891_v40 = vpop.f32.mrf.mxu0 }
  0xf6   : > { %v988_v24 = vpop.eup %987  ;;  %v377_v42 = vpop.f32.mrf.mxu0 }
  0xf7   : > { %v990_v25 = vpop.eup %989  ;;  %v422_v26 = vadd.f32 1.0, %v988_v24 }
  0xf8   : > { %v421_v28 = vadd.f32 1.0, %v990_v25  ;;  %v892_v44 = vpop.f32.mrf.mxu0 }
  0xf9   : > { %993 = vrcp.f32 %v422_v26 }
  0xfa   : > { %v992_v27 = vpop.eup %991  ;;  %v382_v8 = vpop.f32.mrf.mxu0 }
  0xfb   : > { %v423_v29 = vadd.f32 1.0, %v992_v27 }
  0xfc   : > { %v895_v9 = vpop.f32.mrf.mxu0 }
  0xfd   : > { %995 = vrcp.f32 %v423_v29 }
  0xfe   : > { %997 = vrcp.f32 %v421_v28  ;;  %v385_v10 = vpop.f32.mrf.mxu0 }
 0x100   : > { %v896_v11 = vpop.f32.mrf.mxu0 }
 0x102   : > { %v390_v12 = vpop.f32.mrf.mxu0 }
 0x104   : > { %v899_v13 = vpop.f32.mrf.mxu0 }
 0x106   : > { %v994_v30 = vpop.eup %993  ;;  %v393_v14 = vpop.f32.mrf.mxu0 }
 0x108   : > { %v900_v15 = vpop.f32.mrf.mxu0 }
 0x10a   : > { %v996_v31 = vpop.eup %995 }
 0x10b   : > { %v434_v32 = vpack.c.bf16 %v996_v31, %v996_v31  ;;  %v998_v33 = vpop.eup %997 }
 0x10c   : > { %v433_v35 = vpack.c.bf16 %v994_v30, %v998_v33 }
 0x10d   : > { %943 = vmatprep.subr.msk.bf16.mxu1 %vm450_vm5, %v434_v32  ;;  %v452_v34 = vsel %vm450_vm5, %v434_v32, 0 }
 0x10e   : > { %910 = vmatpush3.bf16.msra.mxu1 %v452_v34 }
 0x10f   : > { %911 = vmatprep.subr.bf16.mxu1 %v433_v35 }
 0x112   : > { %912 = vmatpush3.bf16.msra.mxu1 %v433_v35 }
 0x115   : > { %914 = vmatmul.mubr.msk.bf16.vlgmr.msra.gmra.mxu1 %vm443_vm4, %v979_v36 }
 0x116   : > { %921 = vmatprep.mubr.msk.bf16.mxu1 %vm443_vm4, %v982_v47 }
 0x1d5   : > { %v915_v48 = vpop.f32.mrf.mxu1 }
 0x1d6   : > { %v497_v49 = vadd.f32 %v915_v48, %v377_v42  ;;  %v398_v42 = vpop.f32.mrf.mxu0 }
 0x1d7   : > { %v488_v50 = vpop.f32.mrf.mxu1 }
 0x1d8   : > { %v837_v51 = vmul.f32 -1.442695, %v497_v49  ;;  %v489_v52 = vadd.f32 %v488_v50, %v369_v22  ;;  %v903_v43 = vpop.f32.mrf.mxu0 }
 0x1d9   : > { %v916_v53 = vpop.f32.mrf.mxu1 }
 0x1da   : > { %999 = vpow2.f32 %v837_v51  ;;  %v835_v54 = vmul.f32 -1.442695, %v489_v52  ;;  %v401_v44 = vpop.f32.mrf.mxu0 }
 0x1db   : > { %v491_v55 = vpop.f32.mrf.mxu1 }
 0x1dc   : > { %1001 = vpow2.f32 %v835_v54  ;;  %v492_v56 = vadd.f32 %v491_v55, %v374_v38  ;;  %v904_v45 = vpop.f32.mrf.mxu0 }
 0x1de   : > { %v836_v57 = vmul.f32 -1.442695, %v492_v56 }
 0x1e0   : > { %1003 = vpow2.f32 %v836_v57 }
 0x1e7   : > { %v1000_v58 = vpop.eup %999 }
 0x1e8   : > { %v513_v59 = vadd.f32 1.0, %v1000_v58 }
 0x1e9   : > { %v1002_v60 = vpop.eup %1001 }
 0x1ea   : > { %1005 = vrcp.f32 %v513_v59  ;;  %v511_v61 = vadd.f32 1.0, %v1002_v60 }
 0x1ec   : > { %1007 = vrcp.f32 %v511_v61 }
 0x1ed   : > { %v1004_v62 = vpop.eup %1003 }
 0x1ee   : > { %v512_v63 = vadd.f32 1.0, %v1004_v62 }
 0x1f0   : > { %1009 = vrcp.f32 %v512_v63 }
 0x1f7   : > { %v1006_v0 = vpop.eup %1005 }
 0x1f8   : > { %v524_v1 = vpack.c.bf16 %v1006_v0, %v1006_v0 }
 0x1f9   : > { %v1008_v4 = vpop.eup %1007 }
 0x1fa   : > { %944 = vmatprep.subr.msk.bf16.mxu1 %vm450_vm5, %v524_v1  ;;  %v540_v3 = vsel %vm450_vm5, %v524_v1, 0 }
 0x1fb   : > { %918 = vmatpush3.bf16.msra.mxu1 %v540_v3 }
 0x1fd   : > { %v1010_v5 = vpop.eup %1009 }
 0x1fe   : > { %v523_v6 = vpack.c.bf16 %v1010_v5, %v1008_v4  ;;  %v696_v5 = vld [vmem:[%s1234_s3] sm:$0x1] }
 0x200   : > { %919 = vmatprep.subr.bf16.mxu1 %v523_v6 }
 0x201   : > { %920 = vmatpush3.bf16.msra.mxu1 %v523_v6 }
 0x204   : > { %922 = vmatmul.mubr.msk.bf16.vlgmr.msra.gmra.mxu1 %vm443_vm4, %v983_v7 }
 0x205   : > { %929 = vmatprep.mubr.msk.bf16.mxu1 %vm443_vm4, %v985_v17 }
 0x2c4   : > { %v923_v18 = vpop.f32.mrf.mxu1 }
 0x2c5   : > { %v585_v19 = vadd.f32 %v923_v18, %v390_v12 }
 0x2c6   : > { %v576_v20 = vpop.f32.mrf.mxu1 }
 0x2c7   : > { %v844_v21 = vmul.f32 -1.442695, %v585_v19  ;;  %v577_v22 = vadd.f32 %v576_v20, %v382_v8 }
 0x2c8   : > { %v924_v23 = vpop.f32.mrf.mxu1 }
 0x2c9   : > { %1011 = vpow2.f32 %v844_v21  ;;  %v842_v24 = vmul.f32 -1.442695, %v577_v22 }
 0x2ca   : > { %v579_v25 = vpop.f32.mrf.mxu1 }
 0x2cb   : > { %1013 = vpow2.f32 %v842_v24  ;;  %v580_v26 = vadd.f32 %v579_v25, %v385_v10 }
 0x2cd   : > { %v843_v27 = vmul.f32 -1.442695, %v580_v26 }
 0x2cf   : > { %1015 = vpow2.f32 %v843_v27 }
 0x2d6   : > { %v1012_v28 = vpop.eup %1011 }
 0x2d7   : > { %v601_v29 = vadd.f32 1.0, %v1012_v28 }
 0x2d8   : > { %v1014_v30 = vpop.eup %1013 }
 0x2d9   : > { %1017 = vrcp.f32 %v601_v29  ;;  %v599_v31 = vadd.f32 1.0, %v1014_v30 }
 0x2db   : > { %1019 = vrcp.f32 %v599_v31 }
 0x2dc   : > { %v1016_v32 = vpop.eup %1015 }
 0x2dd   : > { %v600_v33 = vadd.f32 1.0, %v1016_v32 }
 0x2df   : > { %1021 = vrcp.f32 %v600_v33 }
 0x2e6   : > { %v1018_v34 = vpop.eup %1017 }
 0x2e7   : > { %v612_v35 = vpack.c.bf16 %v1018_v34, %v1018_v34 }
 0x2e8   : > { %v1020_v38 = vpop.eup %1019 }
 0x2e9   : > { %945 = vmatprep.subr.msk.bf16.mxu1 %vm450_vm5, %v612_v35  ;;  %v628_v36 = vsel %vm450_vm5, %v612_v35, 0 }
 0x2ea   : > { %926 = vmatpush3.bf16.msra.mxu1 %v628_v36 }
 0x2ec   : > { %v1022_v39 = vpop.eup %1021 }
 0x2ed   : > { %v611_v40 = vpack.c.bf16 %v1022_v39, %v1020_v38 }
 0x2ef   : > { %927 = vmatprep.subr.bf16.mxu1 %v611_v40 }
 0x2f0   : > { %928 = vmatpush3.bf16.msra.mxu1 %v611_v40 }
 0x2f1   : > { %933 = vmatprep.subr.bf16.mxu1 %v1063_v2 }
 0x2f3   : > { %930 = vmatmul.mubr.msk.bf16.vlgmr.msra.gmra.mxu1 %vm443_vm4, %v986_v41 }
 0x2f4   : > { %937 = vmatprep.mubr.msk.bf16.mxu1 %vm1065_vm2, %v1063_v2 }
 0x3b3   : > { %v931_v46 = vpop.f32.mrf.mxu1 }
 0x3b4   : > { %v673_v47 = vadd.f32 %v931_v46, %v401_v44 }
 0x3b5   : > { %v664_v48 = vpop.f32.mrf.mxu1 }
 0x3b6   : > { %v851_v49 = vmul.f32 -1.442695, %v673_v47  ;;  %v665_v50 = vadd.f32 %v664_v48, %v393_v14 }
 0x3b7   : > { %v932_v51 = vpop.f32.mrf.mxu1 }
 0x3b8   : > { %1023 = vpow2.f32 %v851_v49  ;;  %v849_v52 = vmul.f32 -1.442695, %v665_v50 }
 0x3b9   : > { %v667_v53 = vpop.f32.mrf.mxu1 }
 0x3ba   : > { %1025 = vpow2.f32 %v849_v52  ;;  %v668_v54 = vadd.f32 %v667_v53, %v398_v42 }
 0x3bc   : > { %v850_v55 = vmul.f32 -1.442695, %v668_v54 }
 0x3be   : > { %1027 = vpow2.f32 %v850_v55 }
 0x3c5   : > { %v1024_v56 = vpop.eup %1023 }
 0x3c6   : > { %v689_v57 = vadd.f32 1.0, %v1024_v56 }
 0x3c7   : > { %v1026_v58 = vpop.eup %1025 }
 0x3c8   : > { %1029 = vrcp.f32 %v689_v57  ;;  %v687_v59 = vadd.f32 1.0, %v1026_v58 }
 0x3ca   : > { %1031 = vrcp.f32 %v687_v59 }
 0x3cb   : > { %v1028_v60 = vpop.eup %1027 }
 0x3cc   : > { %v688_v61 = vadd.f32 1.0, %v1028_v60 }
 0x3ce   : > { %1033 = vrcp.f32 %v688_v61 }
 0x3d5   : > { %v1030_v62 = vpop.eup %1029 }
 0x3d6   : > { %v698_v63 = vpack.c.bf16 %v1030_v62, %v1030_v62 }
 0x3d7   : > { %v1032_v1 = vpop.eup %1031 }
 0x3d8   : > { %v703_v0 = vsel %vm450_vm5, %v698_v63, 0 }
 0x3d9   : > { %934 = vmatpush3.bf16.msra.mxu1 %v703_v0 }
 0x3da   : > { %935 = vmatprep.subr.bf16.mxu1 %v1063_v2 }
 0x3db   : > { %v1034_v3 = vpop.eup %1033 }
 0x3dc   : > { %v697_v4 = vpack.c.bf16 %v1034_v3, %v1032_v1 }
 0x3de   : > { %936 = vmatpush3.bf16.msra.mxu1 %v697_v4 }
 0x3e1   : > { %938 = vmatmul.mubr.msk.bf16.vlgmr.msra.gmra.mxu1 %vm443_vm4, %v696_v5 }
 0x4a1   : > { %v739_v6 = vpop.f32.mrf.mxu1 }
 0x4a2   : > { %v740_v7 = vadd.f32 %v739_v6, %v1166_v37 }
 0x4a3   : > { %v939_v8 = vpop.f32.mrf.mxu1 }
 0x4a4   : > { %v853_v9 = vmul.f32 -1.442695, %v740_v7 }
 0x4a5   : > { %v742_v10 = vpop.f32.mrf.mxu1 }
 0x4a6   : > { %1035 = vpow2.f32 %v853_v9 }
 0x4a7   : > { %v940_v11 = vpop.f32.mrf.mxu1 }
 0x4b3   : > { %v1036_v2 = vpop.eup %1035 }
 0x4b4   : > { %v748_v12 = vadd.f32 1.0, %v1036_v2 }
 0x4b6   : > { %1037 = vrcp.f32 %v748_v12 }
 0x4c3   : > { %v1038_v13 = vpop.eup %1037 }
 0x4c4   : > { %751 = vst [vmem:[%s240_s20] sm:$0x1] %v1038_v13 }
 0x4c5 PF: > { %p11_p9 = scmp.ge.s32.totalorder %s1108_s19, 4   ;;  %s1236_s15 = smov %s1057_s16 }
 0x4c6   : > { %s1237_s16 = smov %s1117_s22  ;;  %s1238_s17 = smov %s1108_s19 }
 0x4c7   :  { %13 = sbr.rel (!%p11_p9) target bundleno = 2 (0x2), region = 112 }

</bundles_post_ra>
